<compile_context>
chip_gen: v5e
topology: v5e:2x2
jax: 0.10.0
libtpu: 0.0.40
codegen_flags: <defaults>
</compile_context>

<pallas_src>
import jax
import jax.numpy as jnp
from jax.experimental import pallas as pl
from jax.experimental.pallas import tpu as pltpu


def _parabola_kernel(p1_ref, p2_ref, o_ref):
    # Pure scalar path: p1_ref / p2_ref are (1,) f32 SMEM refs,
    # o_ref is a (1,) f32 SMEM ref.  ~2 bundles on the scalar ALU.
    p1 = p1_ref[0]
    p2 = p2_ref[0]
    o_ref[0] = p1 * p1 + p2 * p2


def _parabola_fwd_pallas(param1, param2):
    return pl.pallas_call(
        _parabola_kernel,
        out_shape=jax.ShapeDtypeStruct((1,), jnp.float32),
        in_specs=[
            pl.BlockSpec(memory_space=pltpu.MemorySpace.SMEM),
            pl.BlockSpec(memory_space=pltpu.MemorySpace.SMEM),
        ],
        out_specs=pl.BlockSpec(memory_space=pltpu.MemorySpace.SMEM),
        cost_estimate=pl.CostEstimate(flops=3, transcendentals=0,
                                      bytes_accessed=12),
    )(param1, param2)


@jax.custom_vjp
def simple_2d_parabola(x, param1, param2):
    """Forward pass of Simple2DParabola.

    Args:
      x: ignored input (kept for API parity with the nn.Module), NCHW.
      param1, param2: shape (1,) float32 parameters.

    Returns:
      shape (1,) float32 array = param1**2 + param2**2.
    """
    del x  # forward() does not use the input
    # Contract: params are (1,) float32 (asserted here instead of per-call
    # reshape/astype HLOs on the critical path).
    assert param1.shape == (1,) and param1.dtype == jnp.float32, param1
    assert param2.shape == (1,) and param2.dtype == jnp.float32, param2
    return _parabola_fwd_pallas(param1, param2)


def _parabola_vjp_fwd(x, param1, param2):
    out = simple_2d_parabola(x, param1, param2)
    return out, (x, param1, param2)


def _parabola_vjp_bwd(residuals, g):
    # Analytic backward in plain JAX: d/dp (p^2) = 2*p.  x gets zero grad.
    x, param1, param2 = residuals
    return (jnp.zeros_like(x), 2.0 * param1 * g, 2.0 * param2 * g)


simple_2d_parabola.defvjp(_parabola_vjp_fwd, _parabola_vjp_bwd)


if __name__ == "__main__":
    key = jax.random.PRNGKey(0)
    kx, _ = jax.random.split(key)

    # Small example input consistent with a generic NCHW forward signature.
    x = jax.random.normal(kx, (2, 4, 16, 16), dtype=jnp.float32)

    # Deterministic parameter initialization matching the module defaults
    # (initial_x=1.0, initial_y=1.0), each of shape (1,) float32.
    param1 = jnp.array([1.0], dtype=jnp.float32)
    param2 = jnp.array([1.0], dtype=jnp.float32)

    result = simple_2d_parabola(x, param1, param2)
    result = jax.block_until_ready(result)

    expected = param1 ** 2 + param2 ** 2
    assert result.shape == (1,)
    assert result.dtype == jnp.float32
    assert jnp.allclose(result, expected), (result, expected)

    # Gradient check via the analytic custom_vjp (backward is plain JAX).
    loss = lambda p1, p2: jnp.sum(simple_2d_parabola(x, p1, p2))
    g1, g2 = jax.grad(loss, argnums=(0, 1))(param1, param2)
    g1, g2 = jax.block_until_ready((g1, g2))
    assert jnp.allclose(g1, 2.0 * param1), (g1, param1)
    assert jnp.allclose(g2, 2.0 * param2), (g2, param2)

    print("KERNEL_OK")
</pallas_src>

<mosaic_0001>
module attributes {stable_mosaic.version = 11 : i64} {
  func.func @_parabola_kernel(%arg0: memref<1xf32, #tpu.memory_space<smem>>, %arg1: memref<1xf32, #tpu.memory_space<smem>>, %arg2: memref<1xf32, #tpu.memory_space<smem>>) attributes {dimension_semantics = [], scalar_prefetch = 0 : i64, scratch_operands = 0 : i64, tpu.core_type = #tpu.core_type<tc>} {
    %c0 = arith.constant 0 : index
    %0 = memref.load %arg0[%c0] : memref<1xf32, #tpu.memory_space<smem>>
    %c0_0 = arith.constant 0 : index
    %1 = memref.load %arg1[%c0_0] : memref<1xf32, #tpu.memory_space<smem>>
    %2 = arith.mulf %0, %0 : f32
    %3 = arith.mulf %1, %1 : f32
    %4 = arith.addf %2, %3 : f32
    %c0_1 = arith.constant 0 : index
    %5 = memref.load %arg2[%c0_1] : memref<1xf32, #tpu.memory_space<smem>>
    memref.store %4, %arg2[%c0_1] : memref<1xf32, #tpu.memory_space<smem>>
    return
  }
}

</mosaic_0001>

<bundles_post_ra>
// kernel: tpu_custom_call.1
= control target key start
LH: loop header
LB: loop body
LE: loop exit
PB: predicated region body
PF: predicated region fallthrough
CT: control target
= control target key end

     0   :  { %9 = vsyncpa [#allocation5], 0  ;;  %s51_s19 = smov [#allocation4]   ;;  %s78_s0 = inlined_call_operand.<no memory space> [shape: f32[1], index: 0, kind: input, shape index: {}]   ;;  %s79_s1 = inlined_call_operand.<no memory space> [shape: f32[1], index: 1, kind: input, shape index: {}]   ;;  %s80_s2 = inlined_call_operand.hbm [shape: f32[1], index: 2, kind: output, shape index: {}]  }
   0x1   :  { %s16_s11 = smul.f32 %s78_s0, %s78_s0  ;;  %s26_s14 = sshll.u32 %s80_s2, 4  ;;  %s27_s14 = int_to_ptr.hbm [resolvable:$true] %s26_s14 }
   0x2   :  { %s17_s17 = smul.f32 %s79_s1, %s79_s1 }
   0x4   :  { %s18_s18 = sadd.f32 %s17_s17, %s16_s11 }
   0x6   :  { %20 = sst [smem:[#allocation4]] %s18_s18 }
   0x7   :  { %29 = dma.smem_to_hbm %s51_s19, 16, %s27_s14, [#allocation5]  }
   0x8   :  { %49 = dma.done.wait [#allocation5], 16  }
   0x9   :  { %50 = vsyncadd [#allocation5], 4294967280 }
   0xa   :  { %34 = sfence }
   0xb   :  { %35 = vsyncpa [#allocation5], 1 }

</bundles_post_ra>
